<compile_context>
chip_gen: v5e
topology: v5e:2x2
jax: 0.10.0
libtpu: 0.0.40
codegen_flags: <defaults>
</compile_context>

<pallas_src>
import functools

import jax
import jax.numpy as jnp
from jax.experimental import pallas as pl
from jax.experimental.pallas import tpu as pltpu


def _round_up(x, m):
    return ((x + m - 1) // m) * m


def _m_granularity(dtype):
    # Sub-32-bit dtypes pack along sublanes: bf16 native tile (16,128), int8/fp8 (32,128).
    return {4: 8, 2: 16, 1: 32}.get(jnp.dtype(dtype).itemsize, 8)


def _largest_divisor_tile(extent, cap, gran):
    """Largest multiple of `gran` that is <= cap and divides `extent` (extent % gran == 0)."""
    t = max(gran, (min(cap, extent) // gran) * gran)
    while extent % t:
        t -= gran
    return t


def _tpu_vmem_capacity_bytes():
    try:
        return int(pltpu.get_tpu_info().vmem_capacity_bytes)
    except Exception:
        return 64 * 1024 * 1024  # conservative (v7x-sized) fallback


# ----------------------------------------------------------------------------- kernels
def _linear_bias_f32out_kernel(x_ref, w_ref, b_ref, o_ref):
    """f32 output: accumulate directly into the VMEM-resident output tile.

    x_ref: (tm, tk)  feature tile
    w_ref: (tk, tn)  pre-transposed, pre-padded weight tile ([K, C] layout)
    b_ref: (1,  tn)  f32 bias tile (resident across the M and K grid axes)
    o_ref: (tm, tn)  f32 output tile (resident across the K grid axis)
    """
    k = pl.program_id(2)

    @pl.when(k == 0)
    def _():
        # Seed the accumulator with the bias -> no bias add / copy in the epilogue.
        o_ref[...] = jnp.broadcast_to(b_ref[...], o_ref.shape)

    o_ref[...] += jnp.dot(x_ref[...], w_ref[...], preferred_element_type=jnp.float32)


def _linear_bias_acc_kernel(x_ref, w_ref, b_ref, o_ref, acc_ref):
    """Narrow (e.g. bf16) output: f32 VMEM accumulator, cast-only epilogue (v5e-safe)."""
    k = pl.program_id(2)

    @pl.when(k == 0)
    def _():
        acc_ref[...] = jnp.broadcast_to(b_ref[...], acc_ref.shape)

    acc_ref[...] += jnp.dot(x_ref[...], w_ref[...], preferred_element_type=jnp.float32)

    @pl.when(k == pl.num_programs(2) - 1)
    def _():
        o_ref[...] = acc_ref[...].astype(o_ref.dtype)


# ----------------------------------------------------------------------------- wrappers
@functools.partial(jax.jit, static_argnames=("orig_c",))
def _forward_pallas(feature, w_padded_t, b_padded, *, orig_c):
    """feature [B, K] @ weight^T + bias, with weight pre-padded/transposed to [Kp, Np]."""
    B, K = feature.shape
    Kp, Np = w_padded_t.shape

    in_dtype = feature.dtype
    out_dtype = feature.dtype
    in_size = jnp.dtype(in_dtype).itemsize
    w_size = jnp.dtype(w_padded_t.dtype).itemsize
    out_size = jnp.dtype(out_dtype).itemsize
    m_gran = _m_granularity(in_dtype)
    Mp = _round_up(B, m_gran)

    # Per-generation tile caps / VMEM budget.
    vmem_cap = _tpu_vmem_capacity_bytes()
    big_vmem = vmem_cap >= 100 * 1024 * 1024  # v5e / v6e: 128 MiB physical
    if big_vmem:
        tm_cap, tn_cap, tk_cap = 1024, 2048, 1024
        vmem_limit = 96 * 1024 * 1024
    else:  # v7x (64 MiB physical) or unknown
        tm_cap, tn_cap, tk_cap = 512, 1024, 1024
        vmem_limit = 32 * 1024 * 1024

    # Tiles are divisors of the rounded extents -> zero tile-multiple over-padding.
    tm = _largest_divisor_tile(Mp, tm_cap, m_gran)
    tn = _largest_divisor_tile(Np, tn_cap, 128)
    tk = _largest_divisor_tile(Kp, tk_cap, 128)

    # v7x has 2 TensorCores: ensure at least one "parallel" axis has >= 2 tiles.
    if (not big_vmem) and (Mp // tm == 1) and (Np // tn == 1):
        if Np // 128 >= 2:
            tn = _largest_divisor_tile(Np, tn - 128, 128)
        elif Mp // m_gran >= 2:
            tm = _largest_divisor_tile(Mp, tm - m_gran, m_gran)

    # Only the cheap feature pad happens per call (weight/bias were padded at init).
    if Mp != B or Kp != K:
        feature = jnp.pad(feature, ((0, Mp - B), (0, Kp - K)))

    grid = (Mp // tm, Np // tn, Kp // tk)
    use_acc = jnp.dtype(out_dtype) != jnp.dtype(jnp.float32)
    kernel = _linear_bias_acc_kernel if use_acc else _linear_bias_f32out_kernel
    scratch = [pltpu.VMEM((tm, tn), jnp.float32)] if use_acc else []

    out_p = pl.pallas_call(
        kernel,
        out_shape=jax.ShapeDtypeStruct((Mp, Np), out_dtype),
        grid_spec=pltpu.PrefetchScalarGridSpec(
            num_scalar_prefetch=0,
            grid=grid,
            in_specs=[
                pl.BlockSpec((tm, tk), lambda i, j, k: (i, k)),  # feature
                pl.BlockSpec((tk, tn), lambda i, j, k: (k, j)),  # weight, [Kp, Np] layout
                pl.BlockSpec((1, tn), lambda i, j, k: (0, j)),   # bias, resident across M/K
            ],
            out_specs=pl.BlockSpec((tm, tn), lambda i, j, k: (i, j)),
            scratch_shapes=scratch,
        ),
        compiler_params=pltpu.CompilerParams(
            dimension_semantics=("parallel", "parallel", "arbitrary"),
            vmem_limit_bytes=vmem_limit,
        ),
        cost_estimate=pl.CostEstimate(
            flops=2 * Mp * Kp * Np,
            transcendentals=0,
            bytes_accessed=(
                Mp * Kp * in_size * (Np // tn)    # feature re-read once per N tile
                + Kp * Np * w_size * (Mp // tm)   # weight re-read once per M tile
                + Np * 4                          # bias
                + Mp * Np * out_size              # output writeback
            ),
        ),
    )(feature, w_padded_t, b_padded)

    if Mp == B and Np == orig_c:
        return out_p
    return out_p[:B, :orig_c]


@jax.jit
def _forward_small(feature, weight, bias):
    h = jnp.dot(feature, weight.T, preferred_element_type=jnp.float32) + bias
    return h.astype(feature.dtype)


class ClsLossLayerPallas:
    """JAX/Pallas port of cls_loss_layer: forward(feature) = feature @ W^T + b."""

    # Below ~1M padded MACs the pallas_call / grid-step overhead dominates -> jnp.dot.
    _SMALL_THRESHOLD = 1 << 20

    def __init__(self, weight, bias):
        # weight: [class_number, resSize] (nn.Linear storage); bias: [class_number]
        self.weight = weight
        self.bias = bias
        self.class_number, self.res_size = weight.shape
        np_pad = _round_up(self.class_number, 128)
        kp_pad = _round_up(self.res_size, 128)
        # One-time (hoisted) weight re-layout: zero-pad to (128,128) multiples and
        # pre-transpose to [Kp, Np] so the per-call path never pads/transposes the weight.
        w_p = weight
        if np_pad != self.class_number or kp_pad != self.res_size:
            w_p = jnp.pad(weight, ((0, np_pad - self.class_number),
                                   (0, kp_pad - self.res_size)))
        self.w_padded_t = jnp.transpose(w_p)  # [Kp, Np]
        b_p = bias.astype(jnp.float32).reshape(1, -1)
        if np_pad != self.class_number:
            b_p = jnp.pad(b_p, ((0, 0), (0, np_pad - self.class_number)))
        self.b_padded = b_p

    def __call__(self, feature, force_pallas=False):
        B, K = feature.shape
        assert K == self.res_size, "feature dim must match weight in_features"
        m_gran = _m_granularity(feature.dtype)
        mp = _round_up(B, m_gran)
        kp, np_pad = self.w_padded_t.shape
        if (not force_pallas) and mp * np_pad * kp < self._SMALL_THRESHOLD:
            return _forward_small(feature, self.weight, self.bias)
        return _forward_pallas(feature, self.w_padded_t, self.b_padded,
                               orig_c=self.class_number)


if __name__ == "__main__":
    key = jax.random.PRNGKey(0)
    k_feat, k_w, k_feat2, k_w2 = jax.random.split(key, 4)

    # --- Module-consistent small shapes: opt.resSize=32, class_number=8, batch=2 ---
    B, res_size, class_number = 2, 32, 8
    feature = jax.random.normal(k_feat, (B, res_size), dtype=jnp.float32)
    # weights_init: Linear weight ~ N(0, 0.02), bias = 0 (deterministic synthetic init)
    weight = 0.02 * jax.random.normal(k_w, (class_number, res_size), dtype=jnp.float32)
    bias = jnp.zeros((class_number,), dtype=jnp.float32)

    layer = ClsLossLayerPallas(weight, bias)
    ref = feature @ weight.T + bias

    # 1) Force the Pallas kernel even at tiny shape (pads to one (8,128)x(128,128) tile).
    out = jax.block_until_ready(layer(feature, force_pallas=True))
    assert out.shape == (B, class_number)
    assert jnp.allclose(out, ref, atol=1e-5, rtol=1e-5)

    # 2) Auto dispatch at this tiny shape uses the jnp.dot fast path.
    out_auto = jax.block_until_ready(layer(feature))
    assert jnp.allclose(out_auto, ref, atol=1e-5, rtol=1e-5)

    # 3) Modest shape that takes the Pallas path via auto dispatch and exercises
    #    divisor-tile selection (C=384 -> Np=384, K=640 -> Kp=640; no over-padding).
    B2, res2, cls2 = 8, 640, 384
    feature2 = jax.random.normal(k_feat2, (B2, res2), dtype=jnp.float32)
    weight2 = 0.02 * jax.random.normal(k_w2, (cls2, res2), dtype=jnp.float32)
    bias2 = 0.01 * jnp.ones((cls2,), dtype=jnp.float32)
    layer2 = ClsLossLayerPallas(weight2, bias2)
    out2 = jax.block_until_ready(layer2(feature2))
    ref2 = feature2 @ weight2.T + bias2
    assert out2.shape == (B2, cls2)
    assert jnp.allclose(out2, ref2, atol=1e-3, rtol=1e-3)

    # 4) bf16 storage path (narrow-output kernel with f32 accumulator scratch).
    layer2_bf16 = ClsLossLayerPallas(weight2.astype(jnp.bfloat16), bias2)
    out2_bf16 = jax.block_until_ready(
        layer2_bf16(feature2.astype(jnp.bfloat16), force_pallas=True))
    assert out2_bf16.dtype == jnp.bfloat16
    assert jnp.allclose(out2_bf16.astype(jnp.float32), ref2, atol=5e-2, rtol=5e-2)

    print("KERNEL_OK")
</pallas_src>

<mosaic_0001>
module attributes {stable_mosaic.version = 11 : i64} {
  func.func @_linear_bias_f32out_kernel(%arg0: i32, %arg1: i32, %arg2: i32, %arg3: memref<8x128xf32, #tpu.memory_space<vmem>>, %arg4: memref<128x128xf32, #tpu.memory_space<vmem>>, %arg5: memref<1x128xf32, #tpu.memory_space<vmem>>, %arg6: memref<8x128xf32, #tpu.memory_space<vmem>>) attributes {dimension_semantics = [#tpu.dimension_semantics<parallel>, #tpu.dimension_semantics<parallel>, #tpu.dimension_semantics<arbitrary>], iteration_bounds = array<i64: 1, 1, 1>, scalar_prefetch = 0 : i64, scratch_operands = 0 : i64, tpu.core_type = #tpu.core_type<tc>, window_params = [{transform_indices = @transform_0, window_bounds = array<i64: 8, 128>}, {transform_indices = @transform_1, window_bounds = array<i64: 128, 128>}, {transform_indices = @transform_2, window_bounds = array<i64: 1, 128>}, {transform_indices = @transform_3, window_bounds = array<i64: 8, 128>}]} {
    %c0_i32 = arith.constant 0 : i32
    %0 = arith.cmpi eq, %arg2, %c0_i32 : i32
    %1 = arith.extui %0 : i1 to i32
    %c0_i32_0 = arith.constant 0 : i32
    %2 = arith.cmpi ne, %1, %c0_i32_0 : i32
    scf.if %2 {
      %c0_8 = arith.constant 0 : index
      %c0_9 = arith.constant 0 : index
      %9 = vector.load %arg5[%c0_8, %c0_9] : memref<1x128xf32, #tpu.memory_space<vmem>>, vector<1x128xf32>
      %10 = vector.shape_cast %9 : vector<1x128xf32> to vector<1x128xf32>
      %11 = vector.broadcast %10 : vector<1x128xf32> to vector<8x128xf32>
      %c0_10 = arith.constant 0 : index
      %c0_11 = arith.constant 0 : index
      %12 = vector.load %arg6[%c0_10, %c0_11] : memref<8x128xf32, #tpu.memory_space<vmem>>, vector<8x128xf32>
      tpu.vector_store %arg6[%c0_10, %c0_11], %11 {strides = array<i32>} : memref<8x128xf32, #tpu.memory_space<vmem>>, vector<8x128xf32>,
    } else {
    }
    %c0 = arith.constant 0 : index
    %c0_1 = arith.constant 0 : index
    %3 = vector.load %arg6[%c0, %c0_1] : memref<8x128xf32, #tpu.memory_space<vmem>>, vector<8x128xf32>
    %c0_2 = arith.constant 0 : index
    %c0_3 = arith.constant 0 : index
    %4 = vector.load %arg3[%c0_2, %c0_3] : memref<8x128xf32, #tpu.memory_space<vmem>>, vector<8x128xf32>
    %c0_4 = arith.constant 0 : index
    %c0_5 = arith.constant 0 : index
    %5 = vector.load %arg4[%c0_4, %c0_5] : memref<128x128xf32, #tpu.memory_space<vmem>>, vector<128x128xf32>
    %cst = arith.constant dense<0.000000e+00> : vector<8x128xf32>
    %6 = tpu.matmul %4, %5, %cst {dimension_numbers = #tpu.dot_dimension_numbers<[1], [0], [0], [1], [0, 0, 1, 1], [], []>} : vector<8x128xf32>, vector<128x128xf32>, vector<8x128xf32> -> vector<8x128xf32>
    %7 = arith.addf %3, %6 : vector<8x128xf32>
    %c0_6 = arith.constant 0 : index
    %c0_7 = arith.constant 0 : index
    %8 = vector.load %arg6[%c0_6, %c0_7] : memref<8x128xf32, #tpu.memory_space<vmem>>, vector<8x128xf32>
    tpu.vector_store %arg6[%c0_6, %c0_7], %7 {strides = array<i32>} : memref<8x128xf32, #tpu.memory_space<vmem>>, vector<8x128xf32>,
    return
  }
  func.func @transform_0(%arg0: i32, %arg1: i32, %arg2: i32) -> (i32, i32) {
    %c0_i32 = arith.constant 0 : i32
    return %arg0, %arg2 : i32, i32
  }
  func.func @transform_1(%arg0: i32, %arg1: i32, %arg2: i32) -> (i32, i32) {
    %c0_i32 = arith.constant 0 : i32
    return %arg2, %arg1 : i32, i32
  }
  func.func @transform_2(%arg0: i32, %arg1: i32, %arg2: i32) -> (i32, i32) {
    %c0_i32 = arith.constant 0 : i32
    %c0_i32_0 = arith.constant 0 : i32
    return %c0_i32, %arg1 : i32, i32
  }
  func.func @transform_3(%arg0: i32, %arg1: i32, %arg2: i32) -> (i32, i32) {
    %c0_i32 = arith.constant 0 : i32
    return %arg0, %arg1 : i32, i32
  }
}

</mosaic_0001>

<bundles_post_ra>
// kernel: _forward_pallas.1
= control target key start
LH: loop header
LB: loop body
LE: loop exit
PB: predicated region body
PF: predicated region fallthrough
CT: control target
= control target key end

     0   :  { %8 = vsyncpa [#allocation3], 0  ;;  %s114_s15 = smov [#allocation2]   ;;  %s115_s17 = smov 128   ;;  %s149_s0 = inlined_call_operand.vmem [shape: f32[8,128], index: 0, kind: input, shape index: {}]   ;;  %s150_s1 = inlined_call_operand.hbm [shape: f32[128,128], index: 1, kind: input, shape index: {}]   ;;  %s151_s2 = inlined_call_operand.vmem [shape: f32[1,128], index: 2, kind: input, shape index: {}]   ;;  %s152_s3 = inlined_call_operand.vmem [shape: f32[8,128], index: 3, kind: output, shape index: {}]  }
   0x1   :  { %s15_s14 = sshll.u32 %s150_s1, 4  ;;  %s17_s16 = sshll.u32 %s114_s15, 4  ;;  %s16_s14 = int_to_ptr.hbm [resolvable:$true] %s15_s14  ;;  %s18_s16 = int_to_ptr.vmem [resolvable:$true] %s17_s16 }
   0x2   :  { %s116_s18 = smov 8  }
   0x3   :  { %23 = dma.hbm_to_vmem [thread:$0]  %s16_s14, 2048, %s18_s16, [#allocation3], %s115_s17, %s115_s17, %s116_s18  }
   0x4   :  { %112 = dma.done.wait [#allocation3], 2048  }
   0x5   :  { %113 = vsyncadd [#allocation3], 4294965248  ;;  %v56_v0 = vld [vmem:[#allocation2 + $0x78] sm:$0xff]  ;;  %v55_v1 = vld [vmem:[#allocation2 + $0x70] sm:$0xff] }
   0x6   :  { %57 = vmatpush.msra.mxu0 %v56_v0  ;;  %v54_v2 = vld [vmem:[#allocation2 + $0x68] sm:$0xff]  ;;  %v53_v3 = vld [vmem:[#allocation2 + $0x60] sm:$0xff]  ;;  %v52_v4 = vld [vmem:[#allocation2 + $0x58] sm:$0xff] }
   0x7   :  { %v51_v5 = vld [vmem:[#allocation2 + $0x50] sm:$0xff]  ;;  %v50_v6 = vld [vmem:[#allocation2 + $0x48] sm:$0xff]  ;;  %v49_v7 = vld [vmem:[#allocation2 + $0x40] sm:$0xff] }
   0x8   :  { %58 = vmatpush.msra.mxu0 %v55_v1  ;;  %v48_v8 = vld [vmem:[#allocation2 + $0x38] sm:$0xff]  ;;  %v47_v9 = vld [vmem:[#allocation2 + $0x30] sm:$0xff]  ;;  %v46_v10 = vld [vmem:[#allocation2 + $0x28] sm:$0xff] }
   0x9   :  { %v45_v11 = vld [vmem:[#allocation2 + $0x20] sm:$0xff]  ;;  %v44_v12 = vld [vmem:[#allocation2 + $0x18] sm:$0xff]  ;;  %v43_v13 = vld [vmem:[#allocation2 + $0x10] sm:$0xff] }
   0xa   :  { %59 = vmatpush.msra.mxu0 %v54_v2  ;;  %v42_v14 = vld [vmem:[#allocation2 + $0x8] sm:$0xff]  ;;  %v41_v15 = vld [vmem:[#allocation2] sm:$0xff] }
   0xb   :  { %v40_v16 = vld [vmem:[%s149_s0] sm:$0xff] }
   0xc   :  { %60 = vmatpush.msra.mxu0 %v53_v3  ;;  %v87_v17 = vld [vmem:[%s151_s2] ss:$0 sm:$0xff] }
   0xe   :  { %61 = vmatpush.msra.mxu0 %v52_v4 }
  0x10   :  { %62 = vmatpush.msra.mxu0 %v51_v5 }
  0x12   :  { %63 = vmatpush.msra.mxu0 %v50_v6 }
  0x14   :  { %64 = vmatpush.msra.mxu0 %v49_v7 }
  0x16   :  { %65 = vmatpush.msra.mxu0 %v48_v8 }
  0x18   :  { %66 = vmatpush.msra.mxu0 %v47_v9 }
  0x1a   :  { %67 = vmatpush.msra.mxu0 %v46_v10 }
  0x1c   :  { %68 = vmatpush.msra.mxu0 %v45_v11 }
  0x1e   :  { %69 = vmatpush.msra.mxu0 %v44_v12 }
  0x20   :  { %70 = vmatpush.msra.mxu0 %v43_v13 }
  0x22   :  { %71 = vmatpush.msra.mxu0 %v42_v14 }
  0x24   :  { %72 = vmatpush.msra.mxu0 %v41_v15 }
  0x25   :  { %73 = vmatmul.f32.vlgmr.msra.gmra.mxu0 %v40_v16 }
  0xa2   :  { %v74_v18 = vpop.f32.mrf.mxu0 }
  0xa3   :  { %v77_v19 = vadd.f32 %v87_v17, %v74_v18 }
  0xa5   :  { %78 = vst [vmem:[%s152_s3] sm:$0xff] %v77_v19 }
  0xa6   :  { %83 = vsyncpa [#allocation3], 1 }

</bundles_post_ra>
